<compile_context>
chip_gen: v7x
topology: tpu7x:2x2x1
jax: 0.10.0
libtpu: 0.0.40
codegen_flags: <defaults>
</compile_context>

<pallas_src>
import functools

import jax
import jax.numpy as jnp
from jax.experimental import pallas as pl
from jax.experimental.pallas import tpu as pltpu

_LANE = 128
_UNROLL_CLASS_LIMIT = 32  # above this, use a fori_loop online softmax


def _ce_kernel(x_ref, lab_ref, out_ref, *, num_classes, tile_rows, spatial,
               needs_mask):
    """Channels-first softmax cross-entropy; one scalar partial per (n, j)."""
    j = pl.program_id(1)
    lab = lab_ref[0]                                     # (tile_rows, 128) i32

    if num_classes <= _UNROLL_CLASS_LIMIT:
        # Two short passes re-reading each class slab from VMEM: live set is
        # O(1) slabs (m, denom, correct, xf, loss) regardless of C.
        m = x_ref[0, 0]                                  # max in native dtype
        for c in range(1, num_classes):
            m = jnp.maximum(m, x_ref[0, c])
        m = m.astype(jnp.float32)
        denom = jnp.zeros_like(m)
        correct = jnp.zeros_like(m)
        for c in range(num_classes):
            xf = x_ref[0, c].astype(jnp.float32)
            denom = denom + jnp.exp(xf - m)
            correct = jnp.where(lab == c, xf, correct)
        loss = jnp.log(denom) + m - correct              # per-position NLL
    else:
        # Large-C path: one-pass online softmax, no per-class unroll blowup.
        x0 = x_ref[0, 0].astype(jnp.float32)

        def body(c, carry):
            m, d, corr = carry
            xf = x_ref[0, c].astype(jnp.float32)
            m_new = jnp.maximum(m, xf)
            d = d * jnp.exp(m - m_new) + jnp.exp(xf - m_new)
            corr = jnp.where(lab == c, xf, corr)
            return m_new, d, corr

        init = (x0, jnp.ones_like(x0),
                jnp.where(lab == 0, x0, jnp.zeros_like(x0)))
        m, denom, correct = jax.lax.fori_loop(1, num_classes, body, init,
                                              unroll=4)
        loss = jnp.log(denom) + m - correct

    if needs_mask:
        # Only the last spatial tile can overhang the true extent; mask there
        # and keep the steady-state grid steps free of iota/compare/select.
        last = pl.num_programs(1) - 1

        @pl.when(j == last)
        def _():
            row_ids = jax.lax.broadcasted_iota(jnp.int32, (tile_rows, _LANE), 0)
            lane_ids = jax.lax.broadcasted_iota(jnp.int32, (tile_rows, _LANE), 1)
            # NOTE: int32 position index; overflows only for >2^31 positions
            # per batch element (extreme 3-D volumes).
            pos = (j * tile_rows + row_ids) * _LANE + lane_ids
            out_ref[...] = jnp.sum(
                jnp.where(pos < spatial, loss, 0.0)).reshape(1, 1, 1, 1)

        @pl.when(j != last)
        def _():
            out_ref[...] = jnp.sum(loss).reshape(1, 1, 1, 1)
    else:
        out_ref[...] = jnp.sum(loss).reshape(1, 1, 1, 1)


@functools.lru_cache(maxsize=1)
def _pick_vmem_limit():
    """Scoped VMEM limit derived from physical VMEM (fallback: conservative)."""
    try:
        cap = int(pltpu.get_tpu_info().vmem_capacity_bytes)
    except Exception:
        cap = 64 * 1024 * 1024          # assume the smallest (v7x per-TC)
    limit = cap // 2                    # leave half for the rest of the step
    return int(max(32 * 1024 * 1024, min(limit, 96 * 1024 * 1024)))


def _pick_tile_rows(num_classes, rows_total, itemsize, n_batch, budget_bytes):
    """Largest 128-wide row tile whose real working set fits the VMEM budget."""
    # Per 128-wide row: 2x double-buffered logits + 2x double-buffered i32
    # labels + ~8 live f32 elementwise temporaries (m, denom, correct, xf,
    # exp, loss, reduction / mask scratch).
    live_f32_slabs = 8
    per_row = _LANE * (2 * num_classes * itemsize + 2 * 4 + live_f32_slabs * 4)
    tr = int(budget_bytes // per_row)
    tr = max(8, tr - tr % 8)            # multiple of 8 sublanes
    if tr >= rows_total:
        # A single grid step would fully expose the first multi-MiB DMA; keep
        # >= a few j-tiles so prefetch overlaps compute (extra steps ~0.35 us).
        min_steps = 4 if n_batch == 1 else (2 if n_batch == 2 else 1)
        if min_steps > 1 and rows_total >= 8 * min_steps:
            tr = (rows_total // min_steps) // 8 * 8
        else:
            return int(rows_total)      # tiny problem: one full-extent tile
    return int(min(tr, rows_total))


def _cross_entropy_mean_cf(logits_ncs, labels_ns):
    """logits_ncs: (N, C, S) channels-first; labels_ns: (N, S) -> mean CE."""
    N, C, S = logits_ncs.shape
    R = pl.cdiv(S, _LANE)
    S_pad = R * _LANE
    if S_pad != S:
        # TODO(synk): this pad is one extra HBM copy; only taken when the
        # flattened spatial size is not a multiple of 128.
        logits_ncs = jnp.pad(logits_ncs, ((0, 0), (0, 0), (0, S_pad - S)))
        labels_ns = jnp.pad(labels_ns, ((0, 0), (0, S_pad - S)))
    x4 = logits_ncs.reshape(N, C, R, _LANE)
    l3 = labels_ns.reshape(N, R, _LANE)
    if l3.dtype != jnp.int32:
        # TODO(synk): callers with C <= 255/32767 could pass uint8/int16 labels
        # to cut label DMA bytes; widening would then happen in-register.
        l3 = l3.astype(jnp.int32)

    vmem_limit = _pick_vmem_limit()
    tr = _pick_tile_rows(C, R, jnp.dtype(x4.dtype).itemsize, N,
                         budget_bytes=(vmem_limit * 2) // 3)
    num_j = pl.cdiv(R, tr)
    # Mask only if the grid's padded coverage exceeds the true spatial extent.
    needs_mask = (num_j * tr * _LANE != S)

    kernel = functools.partial(_ce_kernel, num_classes=C, tile_rows=tr,
                               spatial=S, needs_mask=needs_mask)

    partials = pl.pallas_call(
        kernel,
        out_shape=jax.ShapeDtypeStruct((N, num_j, 1, 1), jnp.float32),
        grid_spec=pltpu.PrefetchScalarGridSpec(
            num_scalar_prefetch=0,
            grid=(N, num_j),
            in_specs=[
                pl.BlockSpec((1, C, tr, _LANE), lambda n, j: (n, 0, j, 0)),
                pl.BlockSpec((1, tr, _LANE), lambda n, j: (n, j, 0)),
            ],
            out_specs=pl.BlockSpec((1, 1, 1, 1), lambda n, j: (n, j, 0, 0)),
        ),
        compiler_params=pltpu.CompilerParams(
            # Per-(n, j) partials carry no state between steps, so both axes
            # are megacore-shardable (matters on v7x even when N == 1).
            dimension_semantics=("parallel", "parallel"),
            vmem_limit_bytes=vmem_limit,
        ),
    )(x4, l3)
    return jnp.sum(partials) / jnp.float32(N * S)


class UncertaintyCrossEntropyLossV2:
    """JAX/Pallas port of the PyTorch module (forward only)."""

    def __init__(self, uncertainty_threshold):
        assert 0 <= uncertainty_threshold
        self.uncertainty_threshold = uncertainty_threshold

    def __call__(self, preds, labels, uncertainty_maps, logger=None):
        assert 2 <= preds.ndim <= 5
        assert labels.ndim == preds.ndim - 1
        assert uncertainty_maps.ndim == 5  # asserted but unused (matches torch)
        # TODO(synk): torch nn.CrossEntropyLoss defaults to ignore_index=-100;
        # this kernel assumes all labels are valid class indices.
        num_channels = preds.shape[1]

        if preds.ndim == 2:
            # (N, C): treat the batch as the lane ("spatial") axis.
            # TODO(synk): a channels-last kernel variant (class axis on lanes,
            # XLU reduce) would avoid this HBM transpose for huge heads.
            logits_ncs = jnp.transpose(preds, (1, 0))[None]       # (1, C, N)
            labels_ns = labels.reshape(1, -1)
        else:
            n = preds.shape[0]
            s = 1
            for d in preds.shape[2:]:
                s *= d
            # Channels-first flatten: free reshape, NO transpose / HBM copy.
            logits_ncs = preds.reshape(n, num_channels, s)
            labels_ns = labels.reshape(n, s)
        assert logits_ncs.shape[0] * logits_ncs.shape[2] == labels_ns.size
        return _cross_entropy_mean_cf(logits_ncs, labels_ns)

    def get_name(self):
        return 'UncertaintyCrossEntropyLossV2'


def _reference_ce(preds, labels):
    """Pure-JAX reference on channels-first preds (N, C, *spatial)."""
    num_channels = preds.shape[1]
    x = jnp.moveaxis(preds, 1, -1).reshape(-1, num_channels).astype(jnp.float32)
    lab = labels.reshape(-1)
    lse = jax.nn.logsumexp(x, axis=-1)
    correct = jnp.take_along_axis(x, lab[:, None], axis=-1)[:, 0]
    return jnp.mean(lse - correct)


if __name__ == "__main__":
    key = jax.random.PRNGKey(0)
    keys = jax.random.split(key, 10)
    loss_mod = UncertaintyCrossEntropyLossV2(uncertainty_threshold=0.5)

    # Case 1: 4-D NCHW float32, spatial multiple of 128 (zero-copy, no mask).
    N, C, H, W = 2, 4, 16, 16
    preds = jax.random.normal(keys[0], (N, C, H, W), dtype=jnp.float32)
    labels = jax.random.randint(keys[1], (N, H, W), 0, C, dtype=jnp.int32)
    umaps = jnp.zeros((N, 1, 1, H, W), dtype=jnp.float32)  # 5-D, unused
    loss = jax.block_until_ready(loss_mod(preds, labels, umaps))
    ref = _reference_ce(preds, labels)
    assert jnp.allclose(loss, ref, atol=1e-5, rtol=1e-5), (loss, ref)

    # Case 2: ragged spatial size (10x10 = 100 positions -> masked last tile).
    H2, W2 = 10, 10
    preds2 = jax.random.normal(keys[2], (N, C, H2, W2), dtype=jnp.float32)
    labels2 = jax.random.randint(keys[3], (N, H2, W2), 0, C, dtype=jnp.int32)
    umaps2 = jnp.zeros((N, 1, 1, H2, W2), dtype=jnp.float32)
    loss2 = jax.block_until_ready(loss_mod(preds2, labels2, umaps2))
    ref2 = _reference_ce(preds2, labels2)
    assert jnp.allclose(loss2, ref2, atol=1e-5, rtol=1e-5), (loss2, ref2)

    # Case 3: bf16 logits stay bf16 over the DMA and through the max loop.
    preds3 = preds.astype(jnp.bfloat16)
    loss3 = jax.block_until_ready(loss_mod(preds3, labels, umaps))
    ref3 = _reference_ce(preds3, labels)
    assert jnp.allclose(loss3, ref3, atol=1e-5, rtol=1e-5), (loss3, ref3)

    # Case 4: N=1, spatial split into multiple j-tiles (pipeline overlap path,
    # per-(n, j) partial sums, no mask since 64*64 divides evenly).
    N4, C4, H4, W4 = 1, 3, 64, 64
    preds4 = jax.random.normal(keys[4], (N4, C4, H4, W4), dtype=jnp.float32)
    labels4 = jax.random.randint(keys[5], (N4, H4, W4), 0, C4, dtype=jnp.int32)
    umaps4 = jnp.zeros((N4, 1, 1, H4, W4), dtype=jnp.float32)
    loss4 = jax.block_until_ready(loss_mod(preds4, labels4, umaps4))
    ref4 = _reference_ce(preds4, labels4)
    assert jnp.allclose(loss4, ref4, atol=1e-5, rtol=1e-5), (loss4, ref4)

    # Case 5: large class count (C=40) -> fori_loop online-softmax path.
    N5, C5, H5, W5 = 1, 40, 8, 8
    preds5 = jax.random.normal(keys[6], (N5, C5, H5, W5), dtype=jnp.float32)
    labels5 = jax.random.randint(keys[7], (N5, H5, W5), 0, C5, dtype=jnp.int32)
    umaps5 = jnp.zeros((N5, 1, 1, H5, W5), dtype=jnp.float32)
    loss5 = jax.block_until_ready(loss_mod(preds5, labels5, umaps5))
    ref5 = _reference_ce(preds5, labels5)
    assert jnp.allclose(loss5, ref5, atol=1e-5, rtol=1e-5), (loss5, ref5)

    # Case 6: 2-D (N, C) classification path.
    N6, C6 = 16, 4
    preds6 = jax.random.normal(keys[8], (N6, C6), dtype=jnp.float32)
    labels6 = jax.random.randint(keys[9], (N6,), 0, C6, dtype=jnp.int32)
    umaps6 = jnp.zeros((1, 1, 1, 1, 1), dtype=jnp.float32)
    loss6 = jax.block_until_ready(loss_mod(preds6, labels6, umaps6))
    ref6 = _reference_ce(preds6, labels6)
    assert jnp.allclose(loss6, ref6, atol=1e-5, rtol=1e-5), (loss6, ref6)

    print("KERNEL_OK")
</pallas_src>

<mosaic_0001>
module attributes {stable_mosaic.version = 11 : i64} {
  func.func @_ce_kernel(%arg0: i32, %arg1: i32, %arg2: memref<1x4x2x128xf32, #tpu.memory_space<vmem>>, %arg3: memref<1x2x128xi32, #tpu.memory_space<vmem>>, %arg4: memref<1x1x1x1xf32, #tpu.memory_space<vmem>>) attributes {dimension_semantics = [#tpu.dimension_semantics<parallel>, #tpu.dimension_semantics<parallel>], iteration_bounds = array<i64: 2, 1>, scalar_prefetch = 0 : i64, scratch_operands = 0 : i64, tpu.core_type = #tpu.core_type<tc>, window_params = [{transform_indices = @transform_0, window_bounds = array<i64: 1, 4, 2, 128>}, {transform_indices = @transform_1, window_bounds = array<i64: 1, 2, 128>}, {transform_indices = @transform_2, window_bounds = array<i64: 1, 1, 1, 1>}]} {
    %c0 = arith.constant 0 : index
    %c0_0 = arith.constant 0 : index
    %c0_1 = arith.constant 0 : index
    %0 = vector.load %arg3[%c0, %c0_0, %c0_1] : memref<1x2x128xi32, #tpu.memory_space<vmem>>, vector<1x2x128xi32>
    %1 = vector.shape_cast %0 : vector<1x2x128xi32> to vector<2x128xi32>
    %c0_2 = arith.constant 0 : index
    %c0_3 = arith.constant 0 : index
    %c0_4 = arith.constant 0 : index
    %c0_5 = arith.constant 0 : index
    %2 = vector.load %arg2[%c0_2, %c0_3, %c0_4, %c0_5] : memref<1x4x2x128xf32, #tpu.memory_space<vmem>>, vector<1x1x2x128xf32>
    %3 = vector.shape_cast %2 : vector<1x1x2x128xf32> to vector<2x128xf32>
    %c0_6 = arith.constant 0 : index
    %c1 = arith.constant 1 : index
    %c0_7 = arith.constant 0 : index
    %c0_8 = arith.constant 0 : index
    %4 = vector.load %arg2[%c0_6, %c1, %c0_7, %c0_8] : memref<1x4x2x128xf32, #tpu.memory_space<vmem>>, vector<1x1x2x128xf32>
    %5 = vector.shape_cast %4 : vector<1x1x2x128xf32> to vector<2x128xf32>
    %6 = arith.maximumf %3, %5 : vector<2x128xf32>
    %c0_9 = arith.constant 0 : index
    %c2 = arith.constant 2 : index
    %c0_10 = arith.constant 0 : index
    %c0_11 = arith.constant 0 : index
    %7 = vector.load %arg2[%c0_9, %c2, %c0_10, %c0_11] : memref<1x4x2x128xf32, #tpu.memory_space<vmem>>, vector<1x1x2x128xf32>
    %8 = vector.shape_cast %7 : vector<1x1x2x128xf32> to vector<2x128xf32>
    %9 = arith.maximumf %6, %8 : vector<2x128xf32>
    %c0_12 = arith.constant 0 : index
    %c3 = arith.constant 3 : index
    %c0_13 = arith.constant 0 : index
    %c0_14 = arith.constant 0 : index
    %10 = vector.load %arg2[%c0_12, %c3, %c0_13, %c0_14] : memref<1x4x2x128xf32, #tpu.memory_space<vmem>>, vector<1x1x2x128xf32>
    %11 = vector.shape_cast %10 : vector<1x1x2x128xf32> to vector<2x128xf32>
    %12 = arith.maximumf %9, %11 : vector<2x128xf32>
    %cst = arith.constant 0.000000e+00 : f32
    %13 = vector.broadcast %cst : f32 to vector<2x128xf32>
    %cst_15 = arith.constant 0.000000e+00 : f32
    %14 = vector.broadcast %cst_15 : f32 to vector<2x128xf32>
    %c0_16 = arith.constant 0 : index
    %c0_17 = arith.constant 0 : index
    %c0_18 = arith.constant 0 : index
    %c0_19 = arith.constant 0 : index
    %15 = vector.load %arg2[%c0_16, %c0_17, %c0_18, %c0_19] : memref<1x4x2x128xf32, #tpu.memory_space<vmem>>, vector<1x1x2x128xf32>
    %16 = vector.shape_cast %15 : vector<1x1x2x128xf32> to vector<2x128xf32>
    %17 = arith.subf %16, %12 : vector<2x128xf32>
    %18 = math.exp %17 : vector<2x128xf32>
    %19 = arith.addf %13, %18 : vector<2x128xf32>
    %c0_i32 = arith.constant 0 : i32
    %20 = vector.broadcast %c0_i32 : i32 to vector<2x128xi32>
    %21 = arith.cmpi eq, %1, %20 : vector<2x128xi32>
    %22 = arith.select %21, %16, %14 : vector<2x128xi1>, vector<2x128xf32>
    %c0_20 = arith.constant 0 : index
    %c1_21 = arith.constant 1 : index
    %c0_22 = arith.constant 0 : index
    %c0_23 = arith.constant 0 : index
    %23 = vector.load %arg2[%c0_20, %c1_21, %c0_22, %c0_23] : memref<1x4x2x128xf32, #tpu.memory_space<vmem>>, vector<1x1x2x128xf32>
    %24 = vector.shape_cast %23 : vector<1x1x2x128xf32> to vector<2x128xf32>
    %25 = arith.subf %24, %12 : vector<2x128xf32>
    %26 = math.exp %25 : vector<2x128xf32>
    %27 = arith.addf %19, %26 : vector<2x128xf32>
    %c1_i32 = arith.constant 1 : i32
    %28 = vector.broadcast %c1_i32 : i32 to vector<2x128xi32>
    %29 = arith.cmpi eq, %1, %28 : vector<2x128xi32>
    %30 = arith.select %29, %24, %22 : vector<2x128xi1>, vector<2x128xf32>
    %c0_24 = arith.constant 0 : index
    %c2_25 = arith.constant 2 : index
    %c0_26 = arith.constant 0 : index
    %c0_27 = arith.constant 0 : index
    %31 = vector.load %arg2[%c0_24, %c2_25, %c0_26, %c0_27] : memref<1x4x2x128xf32, #tpu.memory_space<vmem>>, vector<1x1x2x128xf32>
    %32 = vector.shape_cast %31 : vector<1x1x2x128xf32> to vector<2x128xf32>
    %33 = arith.subf %32, %12 : vector<2x128xf32>
    %34 = math.exp %33 : vector<2x128xf32>
    %35 = arith.addf %27, %34 : vector<2x128xf32>
    %c2_i32 = arith.constant 2 : i32
    %36 = vector.broadcast %c2_i32 : i32 to vector<2x128xi32>
    %37 = arith.cmpi eq, %1, %36 : vector<2x128xi32>
    %38 = arith.select %37, %32, %30 : vector<2x128xi1>, vector<2x128xf32>
    %c0_28 = arith.constant 0 : index
    %c3_29 = arith.constant 3 : index
    %c0_30 = arith.constant 0 : index
    %c0_31 = arith.constant 0 : index
    %39 = vector.load %arg2[%c0_28, %c3_29, %c0_30, %c0_31] : memref<1x4x2x128xf32, #tpu.memory_space<vmem>>, vector<1x1x2x128xf32>
    %40 = vector.shape_cast %39 : vector<1x1x2x128xf32> to vector<2x128xf32>
    %41 = arith.subf %40, %12 : vector<2x128xf32>
    %42 = math.exp %41 : vector<2x128xf32>
    %43 = arith.addf %35, %42 : vector<2x128xf32>
    %c3_i32 = arith.constant 3 : i32
    %44 = vector.broadcast %c3_i32 : i32 to vector<2x128xi32>
    %45 = arith.cmpi eq, %1, %44 : vector<2x128xi32>
    %46 = arith.select %45, %40, %38 : vector<2x128xi1>, vector<2x128xf32>
    %47 = math.log %43 : vector<2x128xf32>
    %48 = arith.addf %47, %12 : vector<2x128xf32>
    %49 = arith.subf %48, %46 : vector<2x128xf32>
    %50 = vector.shape_cast %49 : vector<2x128xf32> to vector<1x2x128xf32>
    %cst_32 = arith.constant dense<0.000000e+00> : vector<1xf32>
    %51 = vector.multi_reduction <add>, %50, %cst_32 [1, 2] : vector<1x2x128xf32> to vector<1xf32>
    %52 = vector.shape_cast %51 : vector<1xf32> to vector<1x1x1xf32>
    %53 = vector.extract %52[0, 0, 0] : f32 from vector<1x1x1xf32>
    %54 = vector.broadcast %53 : f32 to vector<1x1x1x1xf32>
    %c0_33 = arith.constant 0 : index
    %c0_34 = arith.constant 0 : index
    %c0_35 = arith.constant 0 : index
    %c0_36 = arith.constant 0 : index
    %55 = vector.load %arg4[%c0_33, %c0_34, %c0_35, %c0_36] : memref<1x1x1x1xf32, #tpu.memory_space<vmem>>, vector<1x1x1x1xf32>
    tpu.vector_store %arg4[%c0_33, %c0_34, %c0_35, %c0_36], %54 {strides = array<i32>} : memref<1x1x1x1xf32, #tpu.memory_space<vmem>>, vector<1x1x1x1xf32>,
    return
  }
  func.func @transform_0(%arg0: i32, %arg1: i32) -> (i32, i32, i32, i32) {
    %c0_i32 = arith.constant 0 : i32
    %c0_i32_0 = arith.constant 0 : i32
    %c0_i32_1 = arith.constant 0 : i32
    return %arg0, %c0_i32, %arg1, %c0_i32_0 : i32, i32, i32, i32
  }
  func.func @transform_1(%arg0: i32, %arg1: i32) -> (i32, i32, i32) {
    %c0_i32 = arith.constant 0 : i32
    %c0_i32_0 = arith.constant 0 : i32
    return %arg0, %arg1, %c0_i32 : i32, i32, i32
  }
  func.func @transform_2(%arg0: i32, %arg1: i32) -> (i32, i32, i32, i32) {
    %c0_i32 = arith.constant 0 : i32
    %c0_i32_0 = arith.constant 0 : i32
    %c0_i32_1 = arith.constant 0 : i32
    return %arg0, %arg1, %c0_i32, %c0_i32_0 : i32, i32, i32, i32
  }
}

</mosaic_0001>

<bundles_post_ra>
// kernel: tpu_custom_call.1
= control target key start
LH: loop header
LB: loop body
LE: loop exit
PB: predicated region body
PF: predicated region fallthrough
CT: control target
= control target key end

     0   :  { %7 = vsyncpa [#allocation3], 0  ;;  %s770_s0 = inlined_call_operand.hbm [shape: f32[2,4,2,128], index: 0, kind: input, shape index: {}]   ;;  %s771_s1 = inlined_call_operand.hbm [shape: s32[2,2,128], index: 1, kind: input, shape index: {}]   ;;  %s772_s2 = inlined_call_operand.vmem [shape: f32[2,1,1,1], index: 2, kind: output, shape index: {}]  }
   0x1   :  { %9 = vsyncpa [#allocation3 + $0x1], 0 }
   0x2   :  { %10 = vsyncpa [#allocation5], 0 }
   0x3   :  { %12 = vsyncpa [#allocation5 + $0x1], 0  ;;  %s606_s9 = smov 0   ;;  %s608_s10 = smov 0  }
   0x4   :  { %s610_s11 = smov 0   ;;  %s612_s12 = smov 0  }
   0x5   :  { %s614_s13 = smov 0   ;;  %s616_s14 = smov 0  }
   0x6 LB: > { %s379_s15 = sadd.s32 4294967295, %s585_s14   ;;  %s30_s16 = sadd.s32 1, %s581_s13  ;;  %s585_s14 = sphi %s616_s14, %s18_s14   ;;  %s581_s13 = sphi %s614_s13, %s784_s13   ;;  %s577_s12 = sphi %s612_s12, %s783_s12   ;;  %s573_s11 = sphi %s610_s11, %s782_s11   ;;  %s569_s10 = sphi %s608_s10, %s781_s10   ;;  %s565_s9 = sphi %s606_s9, %s780_s9  }
   0x7   : > { %p32_p0 = scmp.ge.s32.totalorder %s30_s16, 2  ;;  %s39_s17 = sadd.s32 1, %s573_s11 }
   0x8   : > { %p46_p1 = scmp.ne.s32.totalorder %s573_s11, %s569_s10  ;;  %p47_p2 = scmp.eq.s32.totalorder %s585_s14, 0 }
   0x9   : > { %s786_s16 = smov (%p32_p0, %s30_s16), 0  ;;  %p52_p4 = scmp.ne.s32.totalorder %s569_s10, %s565_s9 }
   0xa   : > { %p642_p3 = por %p47_p2, %p46_p1  ;;  %s34_s19 = ssub.s32 %s581_s13, %s786_s16 }
   0xb   : > { %p53_p5 = scmp.eq.s32.totalorder %s379_s15, 0  ;;  %p37_p6 = scmp.eq.s32.totalorder %s34_s19, 0 }
   0xc   : > { %p410_p8 = scmp.lt.s32.totalorder %s585_s14, 2  ;;  %s658_s22 = sand.u32 1, %s573_s11  }
   0xd   : > { %p649_p7 = por %p53_p5, %p52_p4  ;;  %s396_s23 = sshll.u32 %s581_s13, 7 }
   0xe   : > { %s655_s21 = scalar_select %p37_p6, %s573_s11, %s39_s17  }
   0xf   : > { %s775_s20 = scalar_select %p649_p7, 1, 0 }
  0x10   : > { %s383_s24 = sshll.u32 %s658_s22, 3  ;;  %s665_s27 = scalar_lea.hbm %s770_s0, %s396_s23 }
  0x11   : > { %s136_s28 = scalar_lea.vmem [#allocation2], %s383_s24  ;;  %p669_p9 = pnand %p410_p8, %p642_p3 }
  0x12   : > { %s144_s29 = sshll.u32 %s136_s28, 4  ;;  %s133_s3 = scalar_lea.sflag [#allocation3], %s658_s22  ;;  %s673_s29 = int_to_ptr.vmem [resolvable:$true] %s144_s29 }
  0x13   : > { %s471_s4 = scalar_lea.hbm %s665_s27, 128  ;;  %p473_p11 = pneg %p669_p9 }
  0x14   : > { %p472_p10 = scmp.ne.s32.totalorder %s665_s27, %s471_s4  ;;  %s476_s7 = scalar_lea.hbm %s770_s0, 256 }
  0x15   : > { %p477_p0 = scmp.lt.u32.totalorder %s665_s27, %s770_s0  ;;  %p478_p1 = scmp.lt.u32.totalorder %s476_s7, %s471_s4 }
  0x16   : > { %p474_p12 = pnand %p473_p11, %p472_p10  ;;  %p480_p3 = scmp.lt.u32.totalorder %s471_s4, %s665_s27 }
  0x17   : > { %p479_p2 = por %p478_p1, %p477_p0 }
  0x18   : > { %p475_p13 = pneg %p474_p12 }
  0x19   : > { %p481_p4 = por %p480_p3, %p479_p2 }
  0x1b   : > { %p482_p5 = pnand %p481_p4, %p475_p13 }
  0x1d   : > { %485 = shalt.err (!%p482_p5)
}
  0x1e   : > { %s486_s15 = scalar_lea.vmem %s673_s29, 128  ;;  %s587_s17 = smov [#allocation2]  }
  0x1f   : > { %p487_p6 = scmp.ne.s32.totalorder %s673_s29, %s486_s15  ;;  %s491_s18 = sshll.u32 %s587_s17, 4  ;;  %s492_s18 = int_to_ptr.vmem [resolvable:$false] %s491_s18 }
  0x20   : > { %s493_s19 = scalar_lea.vmem %s492_s18, 256  ;;  %p494_p12 = scmp.lt.s32.totalorder %s673_s29, %s492_s18 }
  0x21   : > { %p489_p8 = pnand %p487_p6, %p473_p11  ;;  %p495_p0 = scmp.lt.s32.totalorder %s493_s19, %s486_s15 }
  0x23   : > { %p490_p10 = pneg %p489_p8  ;;  %p496_p1 = por %p495_p0, %p494_p12 }
  0x25   : > { %p497_p2 = pnand %p496_p1, %p490_p10 }
  0x27   : > { %500 = shalt.err (!%p497_p2)
}
  0x28   : > { %s588_s23 = smov 32   ;;  %s589_s24 = smov 2  }
  0x29   : > { %406 = dma.hbm_to_vmem [thread:$0]  (!%p669_p9), %s665_s27, 128, %s673_s29, %s133_s3, %s588_s23, %s588_s23, %s589_s24  }
  0x2a   : > { %p388_p13 = scmp.ge.s32.totalorder %s585_s14, 1  ;;  %p171_p3 = scmp.lt.s32.totalorder %s585_s14, 3 }
  0x2b   : > { %s386_s25 = sshll.u32 %s658_s22, 1  ;;  %s387_s28 = sshll.u32 %s581_s13, 5 }
  0x2c   : > { %p706_p4 = pnand %p388_p13, %p171_p3  ;;  %s158_s4 = scalar_lea.vmem [#allocation4], %s386_s25 }
  0x2d   : > { %s166_s5 = sshll.u32 %s158_s4, 4  ;;  %s714_s8 = scalar_lea.hbm %s771_s1, %s387_s28  ;;  %s167_s5 = int_to_ptr.vmem [resolvable:$true] %s166_s5 }
  0x2e   : > { %s777_s26 = scalar_select %p706_p4, 1, 0 }
  0x2f   : > { %s155_s27 = scalar_lea.sflag [#allocation5], %s658_s22  ;;  %s501_s29 = scalar_lea.hbm %s714_s8, 32 }
  0x30   : > { %p502_p5 = scmp.ne.s32.totalorder %s714_s8, %s501_s29  ;;  %s506_s15 = scalar_lea.hbm %s771_s1, 64 }
  0x31   : > { %p507_p10 = scmp.lt.u32.totalorder %s714_s8, %s771_s1  ;;  %p508_p12 = scmp.lt.u32.totalorder %s506_s15, %s501_s29 }
  0x32   : > { %p504_p6 = pnand %p502_p5, %p473_p11  ;;  %p510_p1 = scmp.lt.u32.totalorder %s501_s29, %s714_s8 }
  0x33   : > { %p509_p0 = por %p508_p12, %p507_p10 }
  0x34   : > { %p505_p8 = pneg %p504_p6 }
  0x35   : > { %p511_p2 = por %p510_p1, %p509_p0 }
  0x37   : > { %p512_p13 = pnand %p511_p2, %p505_p8 }
  0x39   : > { %515 = shalt.err (!%p512_p13)
}
  0x3a   : > { %s516_s22 = scalar_lea.vmem %s167_s5, 32  ;;  %s590_s19 = smov [#allocation4]  }
  0x3b   : > { %p517_p3 = scmp.ne.s32.totalorder %s167_s5, %s516_s22  ;;  %s521_s23 = sshll.u32 %s590_s19, 4  ;;  %s522_s23 = int_to_ptr.vmem [resolvable:$false] %s521_s23 }
  0x3c   : > { %s523_s24 = scalar_lea.vmem %s522_s23, 64  ;;  %p524_p7 = scmp.lt.s32.totalorder %s167_s5, %s522_s23 }
  0x3d   : > { %p519_p5 = pnand %p517_p3, %p473_p11  ;;  %p525_p4 = scmp.lt.s32.totalorder %s523_s24, %s516_s22 }
  0x3f   : > { %p520_p6 = pneg %p519_p5  ;;  %p526_p10 = por %p525_p4, %p524_p7 }
  0x41   : > { %p527_p12 = pnand %p526_p10, %p520_p6 }
  0x43   : > { %530 = shalt.err (!%p527_p12)
}
  0x44   : > { %409 = dma.hbm_to_vmem [thread:$0]  (!%p669_p9), %s714_s8, 32, %s167_s5, %s155_s27  }
  0x45   : > { %p778_p8 = scmp.ne.s32.totalorder %s777_s26, 0 }
  0x46   : > { %s177_s25 = sand.u32 (!%p778_p8), 1, %s569_s10   ;;  %p779_p11 = scmp.ne.s32.totalorder (!%p778_p8), %s775_s20, 0 }
  0x47   : > { %175 = sbr.rel (%p778_p8) target bundleno = 335 (0x14f), region = 28  ;;  %s389_s28 = sshll.u32 (!%p778_p8), %s177_s25, 3 }
  0x48   : > { %s178_s4 = scalar_lea.sflag (!%p778_p8), [#allocation3], %s177_s25  ;;  %s181_s6 = scalar_lea.vmem (!%p778_p8), [#allocation2], %s389_s28 }
  0x4e   : > { %556 = dma.done.wait (%p779_p11), %s178_s4, 128  }
  0x4f   : > { %558 = vsyncadd (%p779_p11), %s178_s4, 4294967168  ;;  %s390_s7 = sshll.u32 %s177_s25, 1  ;;  %s187_s29 = scalar_lea.sflag [#allocation5], %s177_s25 }
  0x50   : > { %s190_s30 = scalar_lea.vmem [#allocation4], %s390_s7 }
  0x51   : > { %560 = dma.done.wait (%p779_p11), %s187_s29, 32  }
  0x52   : > { %562 = vsyncadd (%p779_p11), %s187_s29, 4294967264  ;;  %v224_v0 = vld [vmem:[%s181_s6] sm:$0x3]  ;;  %v391_v1 = vld [vmem:[%s181_s6 + $0x2] sm:$0x3]  ;;  %vm262_vm4 = vcmask 1041408  }
  0x53   : > { %v227_v2 = vmax.f32 %v224_v0, %v391_v1  ;;  %v392_v3 = vld [vmem:[%s181_s6 + $0x4] sm:$0x3]  ;;  %v393_v4 = vld [vmem:[%s181_s6 + $0x6] sm:$0x3]  ;;  %v223_v21 = vld [vmem:[%s190_s30] sm:$0x3] }
  0x54   : > { %vm238_vm0 = vcmp.eq.s32.totalorder %v223_v21, 0  ;;  %vm244_vm1 = vcmp.eq.s32.totalorder %v223_v21, 1  ;;  %vm250_vm2 = vcmp.eq.s32.totalorder %v223_v21, 2  ;;  %vm256_vm3 = vcmp.eq.s32.totalorder %v223_v21, 3  ;;  %p217_p7 = scmp.lt.s32.totalorder %s577_s12, 1 }
  0x55   : > { %v230_v5 = vmax.f32 %v227_v2, %v392_v3  ;;  %v239_v23 = vsel %vm238_vm0, %v224_v0, 0.0  ;;  %vm274_vm5 = vcmask 0  }
  0x56   : > { %v245_v24 = vsel %vm244_vm1, %v391_v1, %v239_v23  ;;  %s788_s12 = smov (!%p217_p7, %s577_s12), 1 }
  0x57   : > { %v233_v6 = vmax.f32 %v230_v5, %v393_v4  ;;  %v251_v25 = vsel %vm250_vm2, %v392_v3, %v245_v24  ;;  %s222_s5 = scalar_lea.vmem %s772_s2, %s788_s12 }
  0x58   : > { %v257_v28 = vsel %vm256_vm3, %v393_v4, %v251_v25 }
  0x59   : > { %v234_v7 = vsub.f32 %v224_v0, %v233_v6  ;;  %v240_v8 = vsub.f32 %v391_v1, %v233_v6  ;;  %v246_v9 = vsub.f32 %v392_v3, %v233_v6  ;;  %v252_v10 = vsub.f32 %v393_v4, %v233_v6 }
  0x5b   : > { %v235_v11 = vmul.f32 1.442695, %v234_v7  ;;  %v241_v12 = vmul.f32 1.442695, %v240_v8  ;;  %v247_v13 = vmul.f32 1.442695, %v246_v9 }
  0x5c   : > { %v253_v14 = vmul.f32 1.442695, %v252_v10 }
  0x5d   : > { %461 = vpow2.f32 %v235_v11 }
  0x5e   : > { %463 = vpow2.f32 %v241_v12 }
  0x5f   : > { %465 = vpow2.f32 %v247_v13 }
  0x60   : > { %467 = vpow2.f32 %v253_v14 }
  0x67   : > { %v462_v15 = vpop.eup %461 }
  0x68   : > { %v464_v16 = vpop.eup %463 }
  0x69   : > { %v466_v17 = vpop.eup %465  ;;  %v243_v18 = vadd.f32 %v464_v16, %v462_v15 }
  0x6a   : > { %v468_v19 = vpop.eup %467 }
  0x6b   : > { %v249_v20 = vadd.f32 %v466_v17, %v243_v18 }
  0x6d   : > { %v255_v22 = vadd.f32 %v468_v19, %v249_v20 }
  0x6f   : > { %469 = vlog2.f32 %v255_v22 }
  0x79   : > { %v470_v26 = vpop.eup %469 }
  0x7a   : > { %v259_v27 = vmul.f32 0.6931472, %v470_v26 }
  0x7c   : > { %v260_v29 = vadd.f32 %v259_v27, %v233_v6 }
  0x7e   : > { %v261_v30 = vsub.f32 %v260_v29, %v257_v28 }
  0x80   : > { %v263_v31 = vsel %vm262_vm4, %v261_v30, 0.0 }
  0x81   : > { %264 = vadd.xlane.f32.xlu0 %v263_v31 }
 0x10e   : > { %v265_v32 = vpop.xlane.xlu0 %264 }
 0x10f   : > { %v266_v33 = vrot.slane %v265_v32, 4 }
 0x111   : > { %v267_v34 = vadd.f32 %v266_v33, %v265_v32 }
 0x113   : > { %v268_v35 = vrot.slane %v267_v34, 2 }
 0x115   : > { %v269_v36 = vadd.f32 %v268_v35, %v267_v34 }
 0x117   : > { %v270_v37 = vrot.slane %v269_v36, 1 }
 0x119   : > { %v271_v38 = vadd.f32 %v270_v37, %v269_v36 }
 0x11b   : > { %397 = vpush %v271_v38 }
 0x14c   : > { %s398_s8 = spop %397 }
 0x14d   : > { %v273_v39 = vstv %s398_s8 }
 0x14e   : > { %275 = vst.msk [vmem:[%s222_s5] sm:$0x1] %vm274_vm5, %v273_v39 }
 0x14f PF: > { %s18_s14 = sadd.s32 1, %s585_s14   ;;  %s780_s9 = smov %s569_s10 }
 0x150   : > { %p15_p9 = scmp.ge.s32.totalorder %s18_s14, 4   ;;  %s781_s10 = smov %s573_s11 }
 0x151   : > { %s782_s11 = smov %s655_s21  ;;  %s783_s12 = smov %s581_s13 }
 0x152   : > { %s784_s13 = smov %s786_s16  ;;  %17 = sbr.rel (!%p15_p9) target bundleno = 6 (0x6), region = 84 }
 0x159   :  { %299 = vsyncpa [#allocation3], 1 }
 0x15a   :  { %301 = vsyncpa [#allocation3 + $0x1], 1 }
 0x15b   :  { %302 = vsyncpa [#allocation5], 1 }
 0x15c   :  { %304 = vsyncpa [#allocation5 + $0x1], 1 }

</bundles_post_ra>
